<compile_context>
chip_gen: v5e
topology: v5e:2x2
jax: 0.10.0
libtpu: 0.0.40
codegen_flags: <defaults>
</compile_context>

<pallas_src>
import functools

import numpy as np
import jax
import jax.numpy as jnp
from jax import lax
from jax.experimental import pallas as pl
from jax.experimental.pallas import tpu as pltpu

FOCAL_ALPHA = 0.25
FOCAL_GAMMA = 2.0
PAD_LOGIT = -40.0      # padded query rows: focal term underflows to 0 in f32


# ---------------------------------------------------------------------------
# Fused negative-branch focal + cardinality kernel, gridded over (B, Q tiles).
# Emits per-(b, q-tile) partial sums -> both grid axes are "parallel".
# ---------------------------------------------------------------------------
def _fused_label_kernel(logits_ref, aux_ref, out_ref, *, gamma):
    x = logits_ref[...].astype(jnp.float32)          # (tq, T)
    m = aux_ref[0:1, :]                              # (1, T) text mask (f32 0/1)
    bias = aux_ref[1:2, :]                           # (1, T) exclude-last bias

    # --- negative-branch focal term: softplus(x) * sigmoid(x)^gamma  (t == 0).
    # sigmoid & softplus share a single exp(-|x|); divide replaced by EUP approx
    # reciprocal + one Newton step (keeps 1e-4 accuracy off the VALU slot).
    z = jnp.exp(-jnp.abs(x))
    softplus_pos = jnp.maximum(x, 0.0) + jnp.log1p(z)        # softplus(x)
    d = 1.0 + z
    r = pl.reciprocal(d, approx=True)
    r = r * (2.0 - d * r)                                    # Newton refinement
    p = jnp.where(x >= 0.0, 1.0, z) * r                      # stable sigmoid(x)
    if float(gamma) == 2.0:
        mod = p * p
    else:
        mod = jnp.power(p, gamma)
    neg = softplus_pos * mod                                 # (1-alpha) applied in wrapper
    focal_partial = jnp.sum(neg * m, keepdims=True)          # (1, 1)

    # --- cardinality: argmax(-1) != T-1  <=>  max over tokens[:-1] >= last logit
    tdim = x.shape[-1]
    last = x[:, tdim - 1:tdim]                               # (tq, 1)
    max_rest = jnp.max(x + bias, axis=-1, keepdims=True)     # (tq, 1)
    card_partial = jnp.sum((max_rest >= last).astype(jnp.float32), keepdims=True)

    lane = lax.broadcasted_iota(jnp.int32, (8, 128), 1)
    out_ref[...] = (jnp.where(lane == 0, focal_partial, 0.0) +
                    jnp.where(lane == 1, card_partial, 0.0))


def _q_tiling(q, q_tile):
    tq = max(8, min(int(q_tile), int(q)))
    tq = ((tq + 7) // 8) * 8                 # multiple-of-8 sublane tile
    q_pad = ((q + tq - 1) // tq) * tq
    return tq, q_pad


def fused_label_losses(pred_logits, text_mask_f32, *, gamma=FOCAL_GAMMA, q_tile=256):
    """Returns (sum of masked negative-branch focal term, per-batch cardinality counts)."""
    B, Q, T = pred_logits.shape
    tq, q_pad = _q_tiling(Q, q_tile)
    nq = q_pad // tq

    logits = pred_logits
    if q_pad != Q:
        # Padded rows contribute exactly 0 to focal (f32 underflow) and exactly
        # 1 each to the cardinality count (corrected below).
        logits = jnp.pad(pred_logits, ((0, 0), (0, q_pad - Q), (0, 0)),
                         constant_values=PAD_LOGIT)

    # Folded (B, 2, T) operand: row 0 = text mask, row 1 = exclude-last-token bias.
    bias_row = jnp.zeros((T,), jnp.float32).at[T - 1].set(-1e30)
    aux = jnp.stack([text_mask_f32, jnp.broadcast_to(bias_row, (B, T))], axis=1)

    kernel = functools.partial(_fused_label_kernel, gamma=float(gamma))
    out = pl.pallas_call(
        kernel,
        out_shape=jax.ShapeDtypeStruct((B, nq, 8, 128), jnp.float32),
        grid=(B, nq),
        in_specs=[
            pl.BlockSpec((None, tq, T), lambda b, q: (b, q, 0)),   # logits (native dtype)
            pl.BlockSpec((None, 2, T), lambda b, q: (b, 0, 0)),    # mask + bias
        ],
        out_specs=pl.BlockSpec((None, None, 8, 128), lambda b, q: (b, q, 0, 0)),
        compiler_params=pltpu.CompilerParams(
            dimension_semantics=("parallel", "parallel")),
    )(logits, aux)

    dense_neg_sum = jnp.sum(out[:, :, 0, 0])                       # scalar
    card_counts = jnp.sum(out[:, :, 0, 1], axis=1) - float(q_pad - Q)   # (B,)
    return dense_neg_sum, card_counts


# ---------------------------------------------------------------------------
# Box losses (L1 + GIoU) — single tiny kernel on a packed [8, Npad] operand
# ---------------------------------------------------------------------------
def _box_loss_kernel(pk_ref, out_ref):
    p = pk_ref[...].astype(jnp.float32)                 # (8, NP): rows 0-3 src, 4-7 tgt
    l1 = jnp.abs(p[0:4, :] - p[4:8, :])                 # (4, NP)
    bbox_sum = jnp.sum(l1)
    xy_sum = jnp.sum(l1[0:2, :])
    hw_sum = jnp.sum(l1[2:4, :])

    sx0 = p[0:1, :] - 0.5 * p[2:3, :]; sx1 = p[0:1, :] + 0.5 * p[2:3, :]
    sy0 = p[1:2, :] - 0.5 * p[3:4, :]; sy1 = p[1:2, :] + 0.5 * p[3:4, :]
    tx0 = p[4:5, :] - 0.5 * p[6:7, :]; tx1 = p[4:5, :] + 0.5 * p[6:7, :]
    ty0 = p[5:6, :] - 0.5 * p[7:8, :]; ty1 = p[5:6, :] + 0.5 * p[7:8, :]

    area_s = (sx1 - sx0) * (sy1 - sy0)
    area_t = (tx1 - tx0) * (ty1 - ty0)
    inter = (jnp.maximum(jnp.minimum(sx1, tx1) - jnp.maximum(sx0, tx0), 0.0) *
             jnp.maximum(jnp.minimum(sy1, ty1) - jnp.maximum(sy0, ty0), 0.0))
    union = area_s + area_t - inter
    # NOTE: no eps clamp, to match the reference semantics exactly (degenerate
    # zero-area boxes would NaN in the PyTorch module as well).
    iou = inter / union
    earea = (jnp.maximum(jnp.maximum(sx1, tx1) - jnp.minimum(sx0, tx0), 0.0) *
             jnp.maximum(jnp.maximum(sy1, ty1) - jnp.minimum(sy0, ty0), 0.0))
    giou = iou - (earea - union) / earea
    giou_sum = jnp.sum(1.0 - giou)    # padding columns (identical boxes) add 0

    lane = lax.broadcasted_iota(jnp.int32, (1, 128), 1)
    out_ref[...] = (jnp.where(lane == 0, bbox_sum, 0.0) +
                    jnp.where(lane == 1, giou_sum, 0.0) +
                    jnp.where(lane == 2, xy_sum, 0.0) +
                    jnp.where(lane == 3, hw_sum, 0.0))


def box_loss_sums(src_boxes, tgt_boxes):
    """src_boxes / tgt_boxes: [N, 4] cxcywh (matched pairs). Returns 4 sums."""
    n = src_boxes.shape[0]
    npad = max(128, ((n + 127) // 128) * 128)
    # one-shot pack: transpose + concat + pad (padding cols = identical boxes -> 0 loss)
    packed = jnp.concatenate([jnp.transpose(src_boxes.astype(jnp.float32)),
                              jnp.transpose(tgt_boxes.astype(jnp.float32))], axis=0)
    packed = jnp.pad(packed, ((0, 0), (0, npad - n)), constant_values=0.5)
    vspec = pl.BlockSpec(memory_space=pltpu.MemorySpace.VMEM)
    out = pl.pallas_call(
        _box_loss_kernel,
        out_shape=jax.ShapeDtypeStruct((1, 128), jnp.float32),
        in_specs=[vspec],
        out_specs=vspec,
    )(packed)
    return out[0, 0], out[0, 1], out[0, 2], out[0, 3]


# ---------------------------------------------------------------------------
# SetCriterion forward (glue: gathers, sparse positive correction, normalization)
# ---------------------------------------------------------------------------
def set_criterion_forward(outputs, targets, indices, label_map_list,
                          focal_alpha=FOCAL_ALPHA, focal_gamma=FOCAL_GAMMA,
                          q_tile=256):
    pred_logits = outputs["pred_logits"]            # [B, Q, T]  (f32 or bf16)
    pred_boxes = outputs["pred_boxes"]              # [B, Q, 4]
    text_mask = outputs["text_mask"]                # [B, T]
    B, Q, T = pred_logits.shape

    # TODO(synk): Hungarian matcher + tokenizer-based create_positive_map have no
    #             Pallas equivalent; `indices` / `label_map_list` arrive as inputs.
    batch_idx = np.concatenate(
        [np.full(len(src), i, dtype=np.int32) for i, (src, _) in enumerate(indices)])
    src_idx = np.concatenate([np.asarray(src, dtype=np.int32) for src, _ in indices])
    pos_rows = np.concatenate(
        [np.asarray(label_map_list[i])[np.asarray(targets[i]["labels"])[np.asarray(tgt)]]
         for i, (_, tgt) in enumerate(indices)], axis=0).astype(np.float32)  # [N, T]

    num_boxes = float(max(sum(len(t["labels"]) for t in targets), 1.0))
    num_pos = float(max(sum(len(src) for src, _ in indices), 1.0))
    tgt_lengths = jnp.asarray([len(t["labels"]) for t in targets], jnp.float32)

    text_mask_f32 = (text_mask != 0).astype(jnp.float32)      # (B, T)

    # --- dense negative-branch focal + cardinality (Pallas, single pass on logits)
    dense_neg_sum, card_counts = fused_label_losses(
        pred_logits, text_mask_f32, gamma=focal_gamma, q_tile=q_tile)

    # --- sparse positive correction (only the N matched rows; plain JAX, N*T tiny)
    if focal_alpha >= 0:
        w_pos, w_neg = float(focal_alpha), float(1.0 - focal_alpha)
    else:
        w_pos = w_neg = 1.0
    bi = jnp.asarray(batch_idx)
    si = jnp.asarray(src_idx)
    xm = pred_logits[bi, si].astype(jnp.float32)              # (N, T)
    mrows = text_mask_f32[bi]                                 # (N, T)
    pos = jnp.asarray(pos_rows)                               # (N, T) strictly 0/1
    pm = jax.nn.sigmoid(xm)
    loss_pos = jax.nn.softplus(-xm) * (1.0 - pm) ** focal_gamma
    loss_neg = jax.nn.softplus(xm) * pm ** focal_gamma
    correction = jnp.sum((w_pos * loss_pos - w_neg * loss_neg) * pos * mrows)
    focal_sum = w_neg * dense_neg_sum + correction

    card_err = jnp.mean(jnp.abs(card_counts - tgt_lengths))

    # --- matched-box gather (data-dependent permutation -> glue) + box kernel
    src_boxes = pred_boxes[bi, si]                            # [N, 4]
    target_boxes = jnp.concatenate(
        [jnp.asarray(targets[i]["boxes"])[np.asarray(tgt)]
         for i, (_, tgt) in enumerate(indices)], axis=0)      # [N, 4]
    bbox_sum, giou_sum, xy_sum, hw_sum = box_loss_sums(src_boxes, target_boxes)

    losses = {
        "loss_ce": focal_sum / num_pos,
        "cardinality_error": card_err,
        "loss_bbox": bbox_sum / num_boxes,
        "loss_giou": giou_sum / num_boxes,
        "loss_xy": xy_sum / num_boxes,
        "loss_hw": hw_sum / num_boxes,
    }
    aux = dict(batch_idx=batch_idx, src_idx=src_idx, pos_rows=pos_rows,
               src_boxes=src_boxes, target_boxes=target_boxes,
               tgt_lengths=tgt_lengths, num_pos=num_pos, num_boxes=num_boxes)
    return losses, aux


# ---------------------------------------------------------------------------
# Pure-JAX reference (sanity check only)
# ---------------------------------------------------------------------------
def _reference(pred_logits, text_mask, one_hot, num_pos, num_boxes,
               src_boxes, tgt_boxes, tgt_lengths, alpha, gamma):
    x = pred_logits.astype(jnp.float32)
    t = one_hot.astype(jnp.float32)
    m = (text_mask != 0).astype(jnp.float32)[:, None, :]
    p = jax.nn.sigmoid(x)
    ce = t * jax.nn.softplus(-x) + (1 - t) * jax.nn.softplus(x)
    p_t = p * t + (1 - p) * (1 - t)
    loss = ce * (1 - p_t) ** gamma
    loss = (alpha * t + (1 - alpha) * (1 - t)) * loss
    loss_ce = jnp.sum(loss * m) / num_pos

    card_pred = jnp.sum(jnp.argmax(x, axis=-1) != (x.shape[-1] - 1), axis=1)
    card_err = jnp.mean(jnp.abs(card_pred.astype(jnp.float32)
                                - tgt_lengths.astype(jnp.float32)))

    l1 = jnp.abs(src_boxes - tgt_boxes)
    loss_bbox = jnp.sum(l1) / num_boxes
    loss_xy = jnp.sum(l1[..., :2]) / num_boxes
    loss_hw = jnp.sum(l1[..., 2:]) / num_boxes

    def cxcywh_to_xyxy(b):
        cx, cy, w, h = b[:, 0], b[:, 1], b[:, 2], b[:, 3]
        return jnp.stack([cx - 0.5 * w, cy - 0.5 * h, cx + 0.5 * w, cy + 0.5 * h], -1)

    sb, tb = cxcywh_to_xyxy(src_boxes), cxcywh_to_xyxy(tgt_boxes)
    area_s = (sb[:, 2] - sb[:, 0]) * (sb[:, 3] - sb[:, 1])
    area_t = (tb[:, 2] - tb[:, 0]) * (tb[:, 3] - tb[:, 1])
    lt = jnp.maximum(sb[:, :2], tb[:, :2])
    rb = jnp.minimum(sb[:, 2:], tb[:, 2:])
    wh = jnp.clip(rb - lt, 0.0)
    inter = wh[:, 0] * wh[:, 1]
    union = area_s + area_t - inter
    iou = inter / union
    lt2 = jnp.minimum(sb[:, :2], tb[:, :2])
    rb2 = jnp.maximum(sb[:, 2:], tb[:, 2:])
    wh2 = jnp.clip(rb2 - lt2, 0.0)
    earea = wh2[:, 0] * wh2[:, 1]
    giou = iou - (earea - union) / earea
    loss_giou = jnp.sum(1.0 - giou) / num_boxes
    return dict(loss_ce=loss_ce, cardinality_error=card_err, loss_bbox=loss_bbox,
                loss_giou=loss_giou, loss_xy=loss_xy, loss_hw=loss_hw)


# ---------------------------------------------------------------------------
if __name__ == "__main__":
    key = jax.random.PRNGKey(0)
    B, Q, T = 2, 30, 256          # Q=30 with q_tile=8 exercises the padding path
    k1, k2 = jax.random.split(key)

    pred_logits = jax.random.normal(k1, (B, Q, T), jnp.float32)
    pred_boxes = jax.nn.sigmoid(jax.random.normal(k2, (B, Q, 4), jnp.float32)) * 0.5 + 0.25

    text_mask_np = np.zeros((B, T), dtype=np.float32)
    text_mask_np[0, :24] = 1.0
    text_mask_np[1, :18] = 1.0
    text_mask = jnp.asarray(text_mask_np)

    # Synthetic targets (labels + normalized cxcywh boxes).
    targets = [
        {"labels": np.array([0, 1]),
         "boxes": np.array([[0.30, 0.40, 0.20, 0.25],
                            [0.60, 0.55, 0.15, 0.30]], dtype=np.float32)},
        {"labels": np.array([1, 0, 2]),
         "boxes": np.array([[0.45, 0.50, 0.30, 0.20],
                            [0.25, 0.30, 0.10, 0.15],
                            [0.70, 0.65, 0.20, 0.20]], dtype=np.float32)},
    ]

    # Synthetic positive maps (stand-in for tokenizer-based create_positive_map):
    # class c of image j is associated with tokens [4*c, 4*c+2).
    label_map_list = []
    for j in range(B):
        lm = np.zeros((3, T), dtype=np.float32)
        for c in range(3):
            lm[c, 4 * c:4 * c + 2] = 1.0
        label_map_list.append(lm)

    # Synthetic matcher output (stand-in for Hungarian matching).
    indices = [
        (np.array([3, 17], dtype=np.int32), np.array([1, 0], dtype=np.int32)),
        (np.array([1, 21, 29], dtype=np.int32), np.array([2, 0, 1], dtype=np.int32)),
    ]

    outputs = {"pred_logits": pred_logits, "pred_boxes": pred_boxes,
               "text_mask": text_mask}

    # q_tile=8 -> tq=8, Q padded 30->32, grid (B=2, nq=4), both axes parallel.
    losses, aux = set_criterion_forward(outputs, targets, indices, label_map_list,
                                        q_tile=8)
    losses = {k: jax.block_until_ready(v) for k, v in losses.items()}

    # Build the dense one_hot only for the pure-JAX reference check.
    one_hot_np = np.zeros((B, Q, T), dtype=np.float32)
    one_hot_np[aux["batch_idx"], aux["src_idx"]] = aux["pos_rows"]

    ref = _reference(pred_logits, text_mask, jnp.asarray(one_hot_np),
                     aux["num_pos"], aux["num_boxes"], aux["src_boxes"],
                     aux["target_boxes"], aux["tgt_lengths"],
                     FOCAL_ALPHA, FOCAL_GAMMA)
    for k in losses:
        np.testing.assert_allclose(np.asarray(losses[k]), np.asarray(ref[k]),
                                   rtol=1e-4, atol=1e-4)
    print("KERNEL_OK")
</pallas_src>

<mosaic_0001>
module attributes {stable_mosaic.version = 11 : i64} {
  func.func @_fused_label_kernel(%arg0: i32, %arg1: i32, %arg2: memref<1x8x256xf32, #tpu.memory_space<vmem>>, %arg3: memref<1x2x256xf32, #tpu.memory_space<vmem>>, %arg4: memref<1x1x8x128xf32, #tpu.memory_space<vmem>>) attributes {dimension_semantics = [#tpu.dimension_semantics<parallel>, #tpu.dimension_semantics<parallel>], iteration_bounds = array<i64: 2, 4>, scalar_prefetch = 0 : i64, scratch_operands = 0 : i64, tpu.core_type = #tpu.core_type<tc>, window_params = [{transform_indices = @transform_0, window_bounds = array<i64: 1, 8, 256>}, {transform_indices = @transform_1, window_bounds = array<i64: 1, 2, 256>}, {transform_indices = @transform_2, window_bounds = array<i64: 1, 1, 8, 128>}]} {
    %c0 = arith.constant 0 : index
    %c0_0 = arith.constant 0 : index
    %c0_1 = arith.constant 0 : index
    %0 = vector.load %arg2[%c0, %c0_0, %c0_1] : memref<1x8x256xf32, #tpu.memory_space<vmem>>, vector<1x8x256xf32>
    %1 = vector.shape_cast %0 : vector<1x8x256xf32> to vector<8x256xf32>
    %c0_2 = arith.constant 0 : index
    %c0_3 = arith.constant 0 : index
    %c0_4 = arith.constant 0 : index
    %2 = vector.load %arg3[%c0_2, %c0_3, %c0_4] : memref<1x2x256xf32, #tpu.memory_space<vmem>>, vector<1x1x256xf32>
    %3 = vector.shape_cast %2 : vector<1x1x256xf32> to vector<1x256xf32>
    %c0_5 = arith.constant 0 : index
    %c1 = arith.constant 1 : index
    %c0_6 = arith.constant 0 : index
    %4 = vector.load %arg3[%c0_5, %c1, %c0_6] : memref<1x2x256xf32, #tpu.memory_space<vmem>>, vector<1x1x256xf32>
    %5 = vector.shape_cast %4 : vector<1x1x256xf32> to vector<1x256xf32>
    %6 = math.absf %1 : vector<8x256xf32>
    %cst = arith.constant 0.000000e+00 : f32
    %7 = vector.broadcast %cst : f32 to vector<8x256xf32>
    %8 = arith.subf %7, %6 : vector<8x256xf32>
    %9 = math.exp %8 : vector<8x256xf32>
    %cst_7 = arith.constant 0.000000e+00 : f32
    %10 = vector.broadcast %cst_7 : f32 to vector<8x256xf32>
    %11 = arith.maximumf %1, %10 : vector<8x256xf32>
    %12 = math.log1p %9 : vector<8x256xf32>
    %13 = arith.addf %11, %12 : vector<8x256xf32>
    %cst_8 = arith.constant 1.000000e+00 : f32
    %14 = vector.broadcast %cst_8 : f32 to vector<8x256xf32>
    %15 = arith.addf %14, %9 : vector<8x256xf32>
    %16 = tpu.reciprocal %15 {approx = true} : vector<8x256xf32> -> vector<8x256xf32>
    %17 = arith.mulf %15, %16 : vector<8x256xf32>
    %cst_9 = arith.constant 2.000000e+00 : f32
    %18 = vector.broadcast %cst_9 : f32 to vector<8x256xf32>
    %19 = arith.subf %18, %17 : vector<8x256xf32>
    %20 = arith.mulf %16, %19 : vector<8x256xf32>
    %cst_10 = arith.constant 0.000000e+00 : f32
    %21 = vector.broadcast %cst_10 : f32 to vector<8x256xf32>
    %22 = arith.cmpf oge, %1, %21 : vector<8x256xf32>
    %cst_11 = arith.constant 1.000000e+00 : f32
    %23 = vector.broadcast %cst_11 : f32 to vector<8x256xf32>
    %24 = arith.select %22, %23, %9 : vector<8x256xi1>, vector<8x256xf32>
    %25 = arith.mulf %24, %20 : vector<8x256xf32>
    %26 = arith.mulf %25, %25 : vector<8x256xf32>
    %27 = arith.mulf %13, %26 : vector<8x256xf32>
    %28 = vector.broadcast %3 : vector<1x256xf32> to vector<8x256xf32>
    %29 = arith.mulf %27, %28 : vector<8x256xf32>
    %30 = vector.shape_cast %29 : vector<8x256xf32> to vector<1x8x256xf32>
    %cst_12 = arith.constant dense<0.000000e+00> : vector<1xf32>
    %31 = vector.multi_reduction <add>, %30, %cst_12 [1, 2] : vector<1x8x256xf32> to vector<1xf32>
    %32 = vector.shape_cast %31 : vector<1xf32> to vector<1x1x1xf32>
    %33 = vector.extract %32[0, 0, 0] : f32 from vector<1x1x1xf32>
    %34 = vector.broadcast %33 : f32 to vector<1x1xf32>
    %35 = vector.extract_strided_slice %1 {offsets = [0, 255], sizes = [8, 1], strides = [1, 1]} : vector<8x256xf32> to vector<8x1xf32>
    %36 = vector.broadcast %5 : vector<1x256xf32> to vector<8x256xf32>
    %37 = arith.addf %1, %36 : vector<8x256xf32>
    %cst_13 = arith.constant dense<0xFF800000> : vector<8xf32>
    %38 = vector.multi_reduction <maximumf>, %37, %cst_13 [1] : vector<8x256xf32> to vector<8xf32>
    %39 = vector.shape_cast %38 : vector<8xf32> to vector<8x1xf32>
    %40 = arith.cmpf oge, %39, %35 : vector<8x1xf32>
    %41 = arith.extui %40 : vector<8x1xi1> to vector<8x1xi32>
    %42 = arith.sitofp %41 : vector<8x1xi32> to vector<8x1xf32>
    %43 = vector.shape_cast %42 : vector<8x1xf32> to vector<1x8x1xf32>
    %cst_14 = arith.constant dense<0.000000e+00> : vector<1xf32>
    %44 = vector.multi_reduction <add>, %43, %cst_14 [1, 2] : vector<1x8x1xf32> to vector<1xf32>
    %45 = vector.shape_cast %44 : vector<1xf32> to vector<1x1x1xf32>
    %46 = vector.extract %45[0, 0, 0] : f32 from vector<1x1x1xf32>
    %47 = vector.broadcast %46 : f32 to vector<1x1xf32>
    %48 = tpu.iota {dimensions = array<i32: 1>} : vector<8x128xi32>
    %c0_i32 = arith.constant 0 : i32
    %49 = vector.broadcast %c0_i32 : i32 to vector<8x128xi32>
    %50 = arith.cmpi eq, %48, %49 : vector<8x128xi32>
    %cst_15 = arith.constant 0.000000e+00 : f32
    %51 = vector.shape_cast %34 : vector<1x1xf32> to vector<1x1xf32>
    %52 = vector.broadcast %51 : vector<1x1xf32> to vector<8x128xf32>
    %53 = vector.broadcast %cst_15 : f32 to vector<8x128xf32>
    %54 = arith.select %50, %52, %53 : vector<8x128xi1>, vector<8x128xf32>
    %c1_i32 = arith.constant 1 : i32
    %55 = vector.broadcast %c1_i32 : i32 to vector<8x128xi32>
    %56 = arith.cmpi eq, %48, %55 : vector<8x128xi32>
    %cst_16 = arith.constant 0.000000e+00 : f32
    %57 = vector.shape_cast %47 : vector<1x1xf32> to vector<1x1xf32>
    %58 = vector.broadcast %57 : vector<1x1xf32> to vector<8x128xf32>
    %59 = vector.broadcast %cst_16 : f32 to vector<8x128xf32>
    %60 = arith.select %56, %58, %59 : vector<8x128xi1>, vector<8x128xf32>
    %61 = arith.addf %54, %60 : vector<8x128xf32>
    %c0_17 = arith.constant 0 : index
    %c0_18 = arith.constant 0 : index
    %c0_19 = arith.constant 0 : index
    %c0_20 = arith.constant 0 : index
    %62 = vector.load %arg4[%c0_17, %c0_18, %c0_19, %c0_20] : memref<1x1x8x128xf32, #tpu.memory_space<vmem>>, vector<1x1x8x128xf32>
    %63 = vector.shape_cast %62 : vector<1x1x8x128xf32> to vector<8x128xf32>
    %64 = vector.shape_cast %61 : vector<8x128xf32> to vector<1x1x8x128xf32>
    tpu.vector_store %arg4[%c0_17, %c0_18, %c0_19, %c0_20], %64 {strides = array<i32>} : memref<1x1x8x128xf32, #tpu.memory_space<vmem>>, vector<1x1x8x128xf32>,
    return
  }
  func.func @transform_0(%arg0: i32, %arg1: i32) -> (i32, i32, i32) {
    %c0_i32 = arith.constant 0 : i32
    %c0_i32_0 = arith.constant 0 : i32
    return %arg0, %arg1, %c0_i32 : i32, i32, i32
  }
  func.func @transform_1(%arg0: i32, %arg1: i32) -> (i32, i32, i32) {
    %c0_i32 = arith.constant 0 : i32
    %c0_i32_0 = arith.constant 0 : i32
    %c0_i32_1 = arith.constant 0 : i32
    return %arg0, %c0_i32, %c0_i32_0 : i32, i32, i32
  }
  func.func @transform_2(%arg0: i32, %arg1: i32) -> (i32, i32, i32, i32) {
    %c0_i32 = arith.constant 0 : i32
    %c0_i32_0 = arith.constant 0 : i32
    %c0_i32_1 = arith.constant 0 : i32
    return %arg0, %arg1, %c0_i32, %c0_i32_0 : i32, i32, i32, i32
  }
}

</mosaic_0001>

<bundles_post_ra>
// kernel: tpu_custom_call.1
= control target key start
LH: loop header
LB: loop body
LE: loop exit
PB: predicated region body
PF: predicated region fallthrough
CT: control target
= control target key end

     0   :  { %7 = vsyncpa [#allocation3], 0  ;;  %s1053_s0 = inlined_call_operand.hbm [shape: f32[2,32,256], index: 0, kind: input, shape index: {}]   ;;  %s1054_s1 = inlined_call_operand.hbm [shape: f32[2,2,256], index: 1, kind: input, shape index: {}]   ;;  %s1055_s2 = inlined_call_operand.hbm [shape: f32[2,4,8,128], index: 2, kind: output, shape index: {}]  }
   0x1   :  { %9 = vsyncpa [#allocation3 + $0x1], 0 }
   0x2   :  { %10 = vsyncpa [#allocation6], 0 }
   0x3   :  { %12 = vsyncpa [#allocation6 + $0x1], 0 }
   0x4   :  { %13 = vsyncpa [#allocation4], 0 }
   0x5   :  { %15 = vsyncpa [#allocation4 + $0x1], 0  ;;  %s810_s9 = smov 0   ;;  %s812_s10 = smov 0  }
   0x6   :  { %s814_s11 = smov 0   ;;  %s816_s12 = smov 0  }
   0x7   :  { %s818_s13 = smov 0   ;;  %s820_s14 = smov 0  }
   0x8   :  { %s822_s15 = smov 0   ;;  %s824_s16 = smov 0  }
   0x9   :  { %s826_s17 = smov 0   ;;  %s828_s18 = smov 0  }
   0xa   :  { %s830_s19 = smov 0  }
   0xb LB: > { %1059 = sst [smem:[#allocation11_spill]] %s783_s17  ;;  %s457_s20 = sadd.s32 4294967295, %s791_s19   ;;  %s791_s19 = sphi %s830_s19, %s21_s19   ;;  %s787_s18 = sphi %s828_s18, %s1084_s18   ;;  %s783_s17 = sphi %s826_s17, %s1075_s17   ;;  %s779_s16 = sphi %s824_s16, %s1083_s16   ;;  %s775_s15 = sphi %s822_s15, %s1074_s15   ;;  %s771_s14 = sphi %s820_s14, %s1082_s14   ;;  %s767_s13 = sphi %s818_s13, %s1081_s13   ;;  %s763_s12 = sphi %s816_s12, %s1080_s12   ;;  %s759_s11 = sphi %s814_s11, %s1079_s11   ;;  %s755_s10 = sphi %s812_s10, %s1078_s10   ;;  %s751_s9 = sphi %s810_s9, %s1077_s9  }
   0xc   : > { %s458_s21 = sadd.s32 4294967294, %s791_s19   ;;  %s30_s22 = sadd.s32 1, %s783_s17 }
   0xd   : > { %s33_s23 = sadd.s32 1, %s787_s18  ;;  %p31_p0 = scmp.ge.s32.totalorder %s30_s22, 4 }
   0xe   : > { %s42_s24 = sadd.s32 1, %s771_s14  ;;  %p49_p1 = scmp.ne.s32.totalorder %s771_s14, %s767_s13 }
   0xf   : > { %p50_p2 = scmp.eq.s32.totalorder %s791_s19, 0  ;;  %s1086_s22 = smov (%p31_p0, %s30_s22), 0 }
  0x10   : > { %1060 = sst [smem:[#allocation12_spill]] %s1086_s22  ;;  %s1088_s23 = smov (!%p31_p0, %s33_s23), %s787_s18 }
  0x11   : > { %s38_s25 = ssub.s32 %s783_s17, %s1086_s22  ;;  %p880_p3 = por %p50_p2, %p49_p1 }
  0x12   : > { %p35_p4 = scmp.ge.s32.totalorder %s1088_s23, 2  ;;  %p55_p5 = scmp.ne.s32.totalorder %s767_s13, %s763_s12 }
  0x13   : > { %p886_p6 = scmp.eq.s32.totalorder %s457_s20, 0  ;;  %p107_p7 = scmp.eq.s32.totalorder %s457_s20, 7 }
  0x14   : > { %s1090_s23 = smov (%p35_p4, %s1088_s23), 0  ;;  %p113_p10 = scmp.eq.s32.totalorder %s458_s21, 7 }
  0x15   : > { %1063 = sst [smem:[#allocation13_spill]] %s1090_s23  ;;  %p894_p8 = por %p886_p6, %p55_p5 }
  0x16   : > { %p898_p9 = por %p107_p7, %p49_p1  ;;  %s904_s30 = ssub.s32 %s787_s18, %s1090_s23 }
  0x17   : > { %s39_s3 = sor.u32 %s38_s25, %s904_s30  ;;  %p66_p11 = scmp.eq.s32.totalorder %s904_s30, 0 }
  0x18   : > { %p40_p12 = scmp.eq.s32.totalorder %s39_s3, 0  ;;  %p908_p13 = por %p113_p10, %p55_p5 }
  0x19   : > { %p501_p0 = scmp.lt.s32.totalorder %s791_s19, 8  ;;  %s133_s6 = sand.u32 1, %s771_s14  }
  0x1a   : > { %s1066_s4 = scalar_select %p908_p13, 1, 0 }
  0x1b   : > { %s914_s5 = scalar_select %p40_p12, %s771_s14, %s42_s24  }
  0x1c   : > { %s462_s7 = sshll.u32 %s783_s17, 1  ;;  %s461_s8 = sshll.u32 %s133_s6, 4 }
  0x1d   : > { %s463_s20 = sshll.u32 %s787_s18, 3  ;;  %s137_s25 = scalar_lea.vmem [#allocation2], %s461_s8 }
  0x1e   : > { %s142_s21 = sadd.s32 %s463_s20, %s462_s7  ;;  %s148_s3 = sshll.u32 %s137_s25, 4  ;;  %s149_s3 = int_to_ptr.vmem [resolvable:$true] %s148_s3 }
  0x1f   : > { %s464_s23 = sshll.u32 %s142_s21, 3  ;;  %p491_p1 = pnand %p501_p0, %p880_p3 }
  0x20   : > { %s144_s17 = scalar_lea.hbm %s1053_s0, %s464_s23  ;;  %p468_p4 = scmp.ge.s32.totalorder %s791_s19, 1 }
  0x21   : > { %s146_s7 = sshll.u32 %s144_s17, 4  ;;  %s134_s8 = scalar_lea.sflag [#allocation3], %s133_s6  ;;  %s147_s7 = int_to_ptr.hbm [resolvable:$true] %s146_s7 }
  0x22   : > { %493 = dma.hbm_to_vmem [thread:$0]  (!%p491_p1), %s147_s7, 256, %s149_s3, %s134_s8  }
  0x23   : > { %p173_p5 = scmp.lt.s32.totalorder %s791_s19, 9  ;;  %s68_s21 = sadd.s32 1, %s759_s11 }
  0x24   : > { %p75_p10 = scmp.ne.s32.totalorder %s759_s11, %s755_s10  ;;  %p81_p13 = scmp.ne.s32.totalorder %s755_s10, %s751_s9 }
  0x25   : > { %p928_p7 = pnand %p468_p4, %p173_p5  ;;  %s155_s23 = sand.u32 1, %s759_s11  }
  0x26   : > { %s938_s22 = scalar_select %p66_p11, %s759_s11, %s68_s21  }
  0x27   : > { %p77_p12 = por %p75_p10, %p50_p2  ;;  %s479_s17 = sshll.u32 %s787_s18, 2 }
  0x28   : > { %p948_p3 = por %p81_p13, %p886_p6  ;;  %s465_s6 = sshll.u32 %s155_s23, 2 }
  0x29   : > { %s164_s24 = scalar_lea.hbm %s1054_s1, %s479_s17  ;;  %s159_s30 = scalar_lea.vmem [#allocation5], %s465_s6 }
  0x2a   : > { %s166_s7 = sshll.u32 %s164_s24, 4  ;;  %s168_s8 = sshll.u32 %s159_s30, 4  ;;  %s167_s7 = int_to_ptr.hbm [resolvable:$true] %s166_s7  ;;  %s169_s8 = int_to_ptr.vmem [resolvable:$true] %s168_s8 }
  0x2b   : > { %p494_p2 = pnand %p501_p0, %p77_p12  ;;  %s156_s9 = scalar_lea.sflag [#allocation6], %s155_s23 }
  0x2c   : > { %177 = sbr.rel (%p928_p7) target bundleno = 481 (0x1e1), region = 28  ;;  %s960_s27 = sand.u32 (!%p928_p7), 1, %s767_s13  }
  0x2d   : > { %496 = dma.hbm_to_vmem [thread:$0]  (!%p494_p2), %s167_s7, 64, %s169_s8, %s156_s9  }
  0x2e   : > { %s469_s21 = sshll.u32 (!%p928_p7), %s960_s27, 4  ;;  %s180_s17 = scalar_lea.sflag (!%p928_p7), [#allocation3], %s960_s27 }
  0x2f   : > { %s183_s25 = scalar_lea.vmem (!%p928_p7), [#allocation2], %s469_s21 }
  0x31   : > { %738 = dma.done.wait (%p894_p8), %s180_s17, 256  }
  0x32   : > { %740 = vsyncadd (%p894_p8), %s180_s17, 4294967040  ;;  %s189_s23 = sand.u32 1, %s755_s10  }
  0x33   : > { %s969_s6 = sshll.u32 %s189_s23, 2  ;;  %s190_s20 = scalar_lea.sflag [#allocation6], %s189_s23 }
  0x34   : > { %s193_s3 = scalar_lea.vmem [#allocation5], %s969_s6 }
  0x35   : > { %742 = dma.done.wait (%p948_p3), %s190_s20, 64  }
  0x36   : > { %744 = vsyncadd (%p948_p3), %s190_s20, 4294967232  ;;  %v220_v0 = vld [vmem:[%s183_s25] sm:$0xff]  ;;  %v976_v1 = vld [vmem:[%s183_s25 + $0x8] sm:$0xff]  ;;  %v793_v61 = vmov 0.0   ;;  %s794_s28 = smov 1   ;;  %vm309_vm5 = vcmask 7168  }
  0x37   : > { %v472_v2 = vld [vmem:[%s193_s3 + $0x1] ss:$2 sm:$0x3]  ;;  %v225_v8 = vand.u32 2147483647, %v220_v0  ;;  %vm265_vm0 = vcmp.ge.f32.partialorder %v220_v0, 0.0 }
  0x38   : > { %v293_v3 = vperm.slane %v472_v2, 0  ;;  %v294_v4 = vperm.slane %v472_v2, 1  ;;  %v226_v9 = vand.u32 2147483647, %v976_v1  ;;  %vm266_vm3 = vcmp.ge.f32.partialorder %v976_v1, 0.0  ;;  %s475_s26 = sshll.u32 %s779_s16, 2 }
  0x39   : > { %v227_v10 = vsub.f32 0.0, %v225_v8  ;;  %v233_v36 = vmax.f32 %v220_v0, 0.0  ;;  %v234_v38 = vmax.f32 %v976_v1, 0.0  ;;  %v222_v45 = vld [vmem:[%s193_s3] ss:$2 sm:$0x3]  ;;  %s341_s24 = sadd.s32 %s775_s15, %s475_s26 }
  0x3a   : > { %v297_v5 = vadd.f32 %v293_v3, %v220_v0  ;;  %v298_v6 = vadd.f32 %v294_v4, %v976_v1  ;;  %v228_v11 = vsub.f32 0.0, %v226_v9  ;;  %v276_v52 = vperm.slane %v222_v45, 0  ;;  %s471_s7 = sshll.u32 %s960_s27, 3  ;;  %s476_s30 = sshll.u32 %s341_s24, 3 }
  0x3b   : > { %v229_v12 = vmul.f32 1.442695, %v227_v10  ;;  %v277_v54 = vperm.slane %v222_v45, 1  ;;  %s343_s17 = scalar_lea.hbm %s1055_s2, %s476_s30  ;;  %s219_s25 = scalar_lea.vmem [#allocation7], %s471_s7 }
  0x3c   : > { %v299_v7 = vmax.f32 %v297_v5, %v298_v6  ;;  %v231_v13 = vmul.f32 1.442695, %v228_v11  ;;  %s345_s23 = sshll.u32 %s219_s25, 4  ;;  %s347_s20 = sshll.u32 %s343_s17, 4  ;;  %s346_s23 = int_to_ptr.vmem [resolvable:$true] %s345_s23  ;;  %s348_s20 = int_to_ptr.hbm [resolvable:$true] %s347_s20 }
  0x3d   : > { %593 = vpow2.f32 %v229_v12  ;;  %s331_s15 = scalar_lea.sflag [#allocation4], %s960_s27  ;;  %s679_s16 = sshra.s32 %s348_s20, 4  ;;  %s680_s16 = int_to_ptr.hbm [resolvable:$true] %s679_s16 }
  0x3e   : > { %300 = vmax.xlane.f32.xlu0 %v299_v7  ;;  %595 = vpow2.f32 %v231_v13  ;;  %s681_s3 = scalar_lea.hbm %s680_s16, 8  ;;  %s685_s24 = scalar_lea.hbm %s1055_s2, 64 }
  0x3f   : > { %p682_p6 = scmp.ne.s32.totalorder %s680_s16, %s681_s3  ;;  %p686_p13 = scmp.lt.s32.totalorder %s680_s16, %s1055_s2 }
  0x40   : > { %p687_p0 = scmp.lt.s32.totalorder %s685_s24, %s681_s3 }
  0x41   : > { %p683_p8 = pnand %p682_p6, %p898_p9 }
  0x42   : > { %p688_p1 = por %p687_p0, %p686_p13 }
  0x43   : > { %v594_v14 = vpop.eup %593  ;;  %p684_p11 = pneg %p683_p8 }
  0x44   : > { %v596_v15 = vpop.eup %595  ;;  %v235_v16 = vadd.f32 1.0, %v594_v14  ;;  %v238_v18 = vmul.f32 -0.5, %v594_v14  ;;  %v241_v21 = vand.u32 2147483647, %v594_v14  ;;  %v267_v41 = vsel %vm265_vm0, 1.0, %v594_v14 }
  0x45   : > { %v244_v17 = vadd.f32 1.0, %v596_v15  ;;  %v247_v19 = vmul.f32 -0.5, %v596_v15  ;;  %v250_v24 = vand.u32 2147483647, %v596_v15  ;;  %v268_v44 = vsel %vm266_vm3, 1.0, %v596_v15  ;;  %p689_p4 = pnand %p688_p1, %p684_p11 }
  0x46   : > { %597 = vlog2.f32 %v235_v16  ;;  %v239_v20 = vadd.f32 1.0, %v238_v18  ;;  %vm982_vm1 = vcmp.lt.f32.partialorder %v241_v21, 0.0004427343 }
  0x47   : > { %599 = vlog2.f32 %v244_v17  ;;  %v248_v22 = vadd.f32 1.0, %v247_v19  ;;  %vm986_vm2 = vcmp.lt.f32.partialorder %v250_v24, 0.0004427343 }
  0x48   : > { %601 = vrcp.f32 %v235_v16  ;;  %v240_v28 = vmul.f32 %v594_v14, %v239_v20 }
  0x49   : > { %603 = vrcp.f32 %v244_v17  ;;  %v249_v32 = vmul.f32 %v596_v15, %v248_v22  ;;  %v320_v15 = vlaneseq }
  0x4c   : > { %v598_v23 = vpop.eup %597 }
  0x4d   : > { %v600_v25 = vpop.eup %599  ;;  %v237_v27 = vmul.f32 0.6931472, %v598_v23 }
  0x4e   : > { %v602_v26 = vpop.eup %601  ;;  %v246_v31 = vmul.f32 0.6931472, %v600_v25 }
  0x4f   : > { %v604_v29 = vpop.eup %603  ;;  %v259_v33 = vmul.f32 %v602_v26, %v235_v16  ;;  %v243_v39 = vsel %vm982_vm1, %v240_v28, %v237_v27  ;;  %v321_v16 = vand.u32 127, %v320_v15 }
  0x50   : > { %v260_v35 = vmul.f32 %v604_v29, %v244_v17  ;;  %v252_v42 = vsel %vm986_vm2, %v249_v32, %v246_v31  ;;  %v253_v47 = vadd.f32 %v243_v39, %v233_v36 }
  0x51   : > { %v261_v37 = vsub.f32 2.0, %v259_v33  ;;  %v254_v49 = vadd.f32 %v252_v42, %v234_v38  ;;  %vm322_vm6 = vcmp.eq.s32.totalorder %v321_v16, 0  ;;  %vm325_vm7 = vcmp.eq.s32.totalorder %v321_v16, 1 }
  0x52   : > { %v262_v40 = vsub.f32 2.0, %v260_v35 }
  0x53   : > { %v263_v43 = vmul.f32 %v602_v26, %v261_v37 }
  0x54   : > { %v264_v46 = vmul.f32 %v604_v29, %v262_v40 }
  0x55   : > { %v269_v48 = vmul.f32 %v267_v41, %v263_v43 }
  0x56   : > { %v270_v50 = vmul.f32 %v268_v44, %v264_v46 }
  0x57   : > { %v271_v51 = vmul.f32 %v269_v48, %v269_v48 }
  0x58   : > { %v272_v53 = vmul.f32 %v270_v50, %v270_v50 }
  0x59   : > { %v273_v55 = vmul.f32 %v271_v51, %v253_v47 }
  0x5a   : > { %v274_v56 = vmul.f32 %v272_v53, %v254_v49 }
  0x5b   : > { %v280_v57 = vmul.f32 %v276_v52, %v273_v55 }
  0x5c   : > { %v281_v58 = vmul.f32 %v277_v54, %v274_v56 }
  0x5e   : > { %v282_v59 = vadd.f32 %v281_v58, %v280_v57 }
  0x60   : > { %283 = vadd.xlane.f32.xlu1 %v282_v59 }
  0xb1   : > { %v301_v60 = vpop.xlane.xlu0 %300 }
  0xb2   : > { %vm302_vm4 = vcmp.ge.f32.partialorder %v301_v60, %v976_v1 }
  0xb3   : > { %v473_v62 = vsel %vm302_vm4, 1.0, %v793_v61 }
  0xb4   : > { %306 = vrot.lane.b32.xlu0 %v473_v62, %s794_s28 }
  0xd3   : > { %v284_v63 = vpop.xlane.xlu1 %283 }
  0xd4   : > { %v285_v0 = vrot.slane %v284_v63, 4 }
  0xd6   : > { %v286_v3 = vadd.f32 %v285_v0, %v284_v63 }
  0xd8   : > { %v287_v5 = vrot.slane %v286_v3, 2 }
  0xda   : > { %v288_v6 = vadd.f32 %v287_v5, %v286_v3 }
  0xdc   : > { %v289_v7 = vrot.slane %v288_v6, 1 }
  0xde   : > { %v290_v8 = vadd.f32 %v289_v7, %v288_v6 }
  0xe0   : > { %480 = vpush %v290_v8 }
 0x111   : > { %s481_s8 = spop %480 }
 0x112   : > { %v323_v17 = vstv %s481_s8 }
 0x113   : > { %v324_v19 = vsel %vm322_vm6, %v323_v17, 0.0 }
 0x126   : > { %v307_v2 = vpop.permute.xlu0 %306 }
 0x127   : > { %v310_v4 = vsel %vm309_vm5, %v307_v2, 0.0 }
 0x128   : > { %311 = vadd.xlane.f32.xlu1 %v310_v4 }
 0x19b   : > { %v312_v1 = vpop.xlane.xlu1 %311 }
 0x19c   : > { %v313_v9 = vrot.slane %v312_v1, 4 }
 0x19e   : > { %v314_v10 = vadd.f32 %v313_v9, %v312_v1 }
 0x1a0   : > { %v315_v11 = vrot.slane %v314_v10, 2 }
 0x1a2   : > { %v316_v12 = vadd.f32 %v315_v11, %v314_v10 }
 0x1a4   : > { %v317_v13 = vrot.slane %v316_v12, 1 }
 0x1a6   : > { %v318_v14 = vadd.f32 %v317_v13, %v316_v12 }
 0x1a8   : > { %482 = vpush %v318_v14 }
 0x1d9   : > { %s483_s6 = spop %482 }
 0x1da   : > { %v326_v18 = vstv %s483_s6 }
 0x1db   : > { %v327_v20 = vsel %vm325_vm7, %v326_v18, 0.0 }
 0x1dc   : > { %v328_v21 = vadd.f32 %v327_v20, %v324_v19 }
 0x1de   : > { %329 = vst [vmem:[%s219_s25] sm:$0xff] %v328_v21 }
 0x1df   : > { %692 = shalt.err (!%p689_p4)
}
 0x1e0   : > { %488 = dma.vmem_to_hbm [thread:$0]  (%p898_p9), %s346_s23, 128, %s348_s20, %s331_s15  }
 0x1e1 PF: > { %p502_p5 = scmp.ge.s32.totalorder %s791_s19, 2  ;;  %s359_s27 = sand.u32 1, %s763_s12  }
 0x1e2   : > { %p1073_p7 = scmp.ne.s32.totalorder %s1066_s4, 0  ;;  %s360_s8 = scalar_lea.sflag [#allocation4], %s359_s27 }
 0x1e4   : > { %p498_p10 = pnand %p502_p5, %p1073_p7 }
 0x1e6   : > { %p499_p12 = pneg %p498_p10 }
 0x1e8   : > { %746 = dma.done.wait (%p499_p12), %s360_s8, 128  }
 0x1e9   : > { %748 = vsyncadd (%p499_p12), %s360_s8, 4294967168  ;;  %s21_s19 = sadd.s32 1, %s791_s19   ;;  %s1074_s15 = sld [smem:[#allocation11_spill]] }
 0x1ea   : > { %p18_p3 = scmp.ge.s32.totalorder %s21_s19, 10   ;;  %s1075_s17 = sld [smem:[#allocation12_spill]] }
 0x1eb   : > { %s1076_s29 = sld [smem:[#allocation13_spill]]  ;;  %s1077_s9 = smov %s755_s10 }
 0x1ec   : > { %s1078_s10 = smov %s759_s11  ;;  %s1079_s11 = smov %s938_s22 }
 0x1ed   : > { %s1080_s12 = smov %s767_s13  ;;  %s1081_s13 = smov %s771_s14 }
 0x1ee   : > { %s1082_s14 = smov %s914_s5  ;;  %s1083_s16 = smov %s787_s18 }
 0x1ef   :  { %20 = sbr.rel (!%p18_p3) target bundleno = 11 (0xb), region = 87 }
 0x1f1   : > { %s1084_s18 = smov %s1076_s29 }
 0x1f4   :  { %366 = vsyncpa [#allocation3], 1 }
 0x1f5   :  { %368 = vsyncpa [#allocation3 + $0x1], 1 }
 0x1f6   :  { %369 = vsyncpa [#allocation6], 1 }
 0x1f7   :  { %371 = vsyncpa [#allocation6 + $0x1], 1 }
 0x1f8   :  { %372 = vsyncpa [#allocation4], 1 }
 0x1f9   :  { %374 = vsyncpa [#allocation4 + $0x1], 1 }

</bundles_post_ra>
